<compile_context>
chip_gen: v6e
topology: v6e:2x2x1
jax: 0.10.0
libtpu: 0.0.40
codegen_flags: <defaults>
</compile_context>

<pallas_src>
import jax
import jax.numpy as jnp
from jax.experimental import pallas as pl
from jax.experimental.pallas import tpu as pltpu


def _transition_down_kernel(x_ref, scale_ref, shift_ref, w_ref, b_ref, sel_ref,
                            o_ref):
    """Fused BN + ReLU + 1x1 conv + 2x2 max pool for one batch element.

    x_ref:     (1, C, H*W)         input feature map, channels-major, spatial on lanes
    scale_ref: (C, 1)              folded BN scale  = gamma / sqrt(var + eps)
    shift_ref: (C, 1)              folded BN shift  = beta - mean * scale
    w_ref:     (C, C)              1x1 conv weights (Cout, Cin)
    b_ref:     (C, 1)              conv bias
    sel_ref:   (4, H*W, H*W//4)    0/1 gather matrices, one per 2x2 pooling tap
    o_ref:     (1, C, H*W//4)      pooled output (row-major (H/2, W/2) flattening)
    """
    x = x_ref[0]                                                     # (C, HW)

    # BatchNorm (folded affine) + ReLU on the VPU; lane-dense (C, HW).
    a = jnp.maximum(x * scale_ref[...] + shift_ref[...], 0.0)

    # 1x1 conv as one (C, C) x (C, HW) MXU matmul; bias added once afterwards.
    y = jnp.dot(w_ref[...], a, preferred_element_type=jnp.float32)
    y = y + b_ref[...]                                               # (C, HW)

    # TODO(synk): Dropout2d(p=0.2) is identity in eval mode; training-mode
    # channel dropout is not implemented.

    # MaxPool2d(kernel_size=2, stride=2): gather each of the 4 taps of the 2x2
    # window with a one-hot selection matmul (exact in f32), then elementwise max.
    t0 = jnp.dot(y, sel_ref[0], preferred_element_type=jnp.float32)  # (C, HW/4)
    t1 = jnp.dot(y, sel_ref[1], preferred_element_type=jnp.float32)
    t2 = jnp.dot(y, sel_ref[2], preferred_element_type=jnp.float32)
    t3 = jnp.dot(y, sel_ref[3], preferred_element_type=jnp.float32)
    o_ref[0] = jnp.maximum(jnp.maximum(t0, t1), jnp.maximum(t2, t3))


def _make_pool_selectors(H, W):
    """(4, H*W, (H//2)*(W//2)) 0/1 matrices: tap (dy, dx) gathers y[2i+dy, 2j+dx]."""
    HW = H * W
    i = jnp.arange(H // 2)
    j = jnp.arange(W // 2)
    rng = jnp.arange(HW)[:, None]
    sels = []
    for dy in range(2):
        for dx in range(2):
            src = ((2 * i[:, None] + dy) * W + (2 * j[None, :] + dx)).reshape(-1)
            sels.append((rng == src[None, :]).astype(jnp.float32))   # (HW, P)
    return jnp.stack(sels, axis=0)


def transition_down_forward(x_nchw, params, eps=1e-5):
    """TransitionDown forward on NCHW input; returns NCHW (N, C, H//2, W//2)."""
    N, C, H, W = x_nchw.shape
    assert H % 2 == 0 and W % 2 == 0
    HW = H * W
    P = (H // 2) * (W // 2)

    # Free reshapes only (channels stay major; spatial flattened onto lanes).
    x2 = x_nchw.reshape(N, C, HW).astype(jnp.float32)

    scale_v = params["gamma"] / jnp.sqrt(params["var"] + eps)
    shift_v = params["beta"] - params["mean"] * scale_v
    scale = scale_v.reshape(C, 1).astype(jnp.float32)
    shift = shift_v.reshape(C, 1).astype(jnp.float32)
    w = params["w"].astype(jnp.float32)                  # (Cout, Cin)
    b = params["b"].reshape(C, 1).astype(jnp.float32)
    sel = _make_pool_selectors(H, W)                     # (4, HW, P)

    out = pl.pallas_call(
        _transition_down_kernel,
        out_shape=jax.ShapeDtypeStruct((N, C, P), jnp.float32),
        grid_spec=pltpu.PrefetchScalarGridSpec(
            num_scalar_prefetch=0,
            grid=(N,),
            in_specs=[
                pl.BlockSpec((1, C, HW), lambda n: (n, 0, 0)),
                pl.BlockSpec((C, 1), lambda n: (0, 0)),
                pl.BlockSpec((C, 1), lambda n: (0, 0)),
                pl.BlockSpec((C, C), lambda n: (0, 0)),
                pl.BlockSpec((C, 1), lambda n: (0, 0)),
                pl.BlockSpec((4, HW, P), lambda n: (0, 0, 0)),
            ],
            out_specs=pl.BlockSpec((1, C, P), lambda n: (n, 0, 0)),
        ),
        compiler_params=pltpu.CompilerParams(
            dimension_semantics=("parallel",)),
    )(x2, scale, shift, w, b, sel)

    return out.reshape(N, C, H // 2, W // 2)


def init_transition_down_params(key, channels):
    """Deterministic synthetic parameters matching the PyTorch module shapes."""
    k_g, k_b, k_m, k_v, k_w, k_cb = jax.random.split(key, 6)
    return dict(
        gamma=jax.random.uniform(k_g, (channels,), jnp.float32, 0.8, 1.2),
        beta=0.1 * jax.random.normal(k_b, (channels,), jnp.float32),
        mean=0.1 * jax.random.normal(k_m, (channels,), jnp.float32),
        var=jax.random.uniform(k_v, (channels,), jnp.float32, 0.5, 1.5),
        # 1x1 conv weight as (Cout, Cin); equals PyTorch weight[:, :, 0, 0].
        w=jax.random.normal(k_w, (channels, channels), jnp.float32)
          / jnp.sqrt(float(channels)),
        b=0.01 * jax.random.normal(k_cb, (channels,), jnp.float32),
    )


def _transition_down_reference(x_nchw, params, eps=1e-5):
    """Pure-JAX reference for correctness checking."""
    x = x_nchw.astype(jnp.float32)
    scale = params["gamma"] / jnp.sqrt(params["var"] + eps)
    shift = params["beta"] - params["mean"] * scale
    a = jnp.maximum(x * scale[None, :, None, None]
                    + shift[None, :, None, None], 0.0)
    y = jnp.einsum("oc,nchw->nohw", params["w"], a) \
        + params["b"][None, :, None, None]
    N, C, H, W = y.shape
    y = y.reshape(N, C, H // 2, 2, W // 2, 2)
    return jnp.max(y, axis=(3, 5))


if __name__ == "__main__":
    # Small shapes consistent with the module: NCHW input.
    batch, in_channels, H, W = 2, 4, 16, 16

    key = jax.random.PRNGKey(0)
    key, kx = jax.random.split(key)
    x = jax.random.normal(kx, (batch, in_channels, H, W), jnp.float32)

    params = init_transition_down_params(key, in_channels)

    y = jax.block_until_ready(transition_down_forward(x, params))
    assert y.shape == (batch, in_channels, H // 2, W // 2), y.shape

    y_ref = jax.block_until_ready(_transition_down_reference(x, params))
    assert jnp.allclose(y, y_ref, atol=1e-3, rtol=1e-3), (
        float(jnp.max(jnp.abs(y - y_ref))))

    print("KERNEL_OK")
</pallas_src>

<mosaic_0001>
module attributes {stable_mosaic.version = 11 : i64} {
  func.func @_transition_down_kernel(%arg0: i32, %arg1: memref<1x4x256xf32, #tpu.memory_space<vmem>>, %arg2: memref<4x1xf32, #tpu.memory_space<vmem>>, %arg3: memref<4x1xf32, #tpu.memory_space<vmem>>, %arg4: memref<4x4xf32, #tpu.memory_space<vmem>>, %arg5: memref<4x1xf32, #tpu.memory_space<vmem>>, %arg6: memref<4x256x64xf32, #tpu.memory_space<vmem>>, %arg7: memref<1x4x64xf32, #tpu.memory_space<vmem>>) attributes {dimension_semantics = [#tpu.dimension_semantics<parallel>], iteration_bounds = array<i64: 2>, scalar_prefetch = 0 : i64, scratch_operands = 0 : i64, tpu.core_type = #tpu.core_type<tc>, window_params = [{transform_indices = @transform_0, window_bounds = array<i64: 1, 4, 256>}, {pipeline_mode = #tpu.pipeline_mode<synchronous>, transform_indices = @transform_1, window_bounds = array<i64: 4, 1>}, {pipeline_mode = #tpu.pipeline_mode<synchronous>, transform_indices = @transform_2, window_bounds = array<i64: 4, 1>}, {pipeline_mode = #tpu.pipeline_mode<synchronous>, transform_indices = @transform_3, window_bounds = array<i64: 4, 4>}, {pipeline_mode = #tpu.pipeline_mode<synchronous>, transform_indices = @transform_4, window_bounds = array<i64: 4, 1>}, {pipeline_mode = #tpu.pipeline_mode<synchronous>, transform_indices = @transform_5, window_bounds = array<i64: 4, 256, 64>}, {transform_indices = @transform_6, window_bounds = array<i64: 1, 4, 64>}]} {
    %c0 = arith.constant 0 : index
    %c0_0 = arith.constant 0 : index
    %c0_1 = arith.constant 0 : index
    %0 = vector.load %arg1[%c0, %c0_0, %c0_1] : memref<1x4x256xf32, #tpu.memory_space<vmem>>, vector<1x4x256xf32>
    %1 = vector.shape_cast %0 : vector<1x4x256xf32> to vector<4x256xf32>
    %c0_2 = arith.constant 0 : index
    %c0_3 = arith.constant 0 : index
    %2 = vector.load %arg2[%c0_2, %c0_3] : memref<4x1xf32, #tpu.memory_space<vmem>>, vector<4x1xf32>
    %3 = vector.broadcast %2 : vector<4x1xf32> to vector<4x256xf32>
    %4 = arith.mulf %1, %3 : vector<4x256xf32>
    %c0_4 = arith.constant 0 : index
    %c0_5 = arith.constant 0 : index
    %5 = vector.load %arg3[%c0_4, %c0_5] : memref<4x1xf32, #tpu.memory_space<vmem>>, vector<4x1xf32>
    %6 = vector.broadcast %5 : vector<4x1xf32> to vector<4x256xf32>
    %7 = arith.addf %4, %6 : vector<4x256xf32>
    %cst = arith.constant 0.000000e+00 : f32
    %8 = vector.broadcast %cst : f32 to vector<4x256xf32>
    %9 = arith.maximumf %7, %8 : vector<4x256xf32>
    %c0_6 = arith.constant 0 : index
    %c0_7 = arith.constant 0 : index
    %10 = vector.load %arg4[%c0_6, %c0_7] : memref<4x4xf32, #tpu.memory_space<vmem>>, vector<4x4xf32>
    %cst_8 = arith.constant dense<0.000000e+00> : vector<4x256xf32>
    %11 = tpu.matmul %10, %9, %cst_8 {dimension_numbers = #tpu.dot_dimension_numbers<[1], [0], [0], [1], [0, 0, 1, 1], [], []>} : vector<4x4xf32>, vector<4x256xf32>, vector<4x256xf32> -> vector<4x256xf32>
    %c0_9 = arith.constant 0 : index
    %c0_10 = arith.constant 0 : index
    %12 = vector.load %arg5[%c0_9, %c0_10] : memref<4x1xf32, #tpu.memory_space<vmem>>, vector<4x1xf32>
    %13 = vector.broadcast %12 : vector<4x1xf32> to vector<4x256xf32>
    %14 = arith.addf %11, %13 : vector<4x256xf32>
    %c0_11 = arith.constant 0 : index
    %c0_12 = arith.constant 0 : index
    %c0_13 = arith.constant 0 : index
    %15 = vector.load %arg6[%c0_11, %c0_12, %c0_13] : memref<4x256x64xf32, #tpu.memory_space<vmem>>, vector<1x256x64xf32>
    %16 = vector.shape_cast %15 : vector<1x256x64xf32> to vector<256x64xf32>
    %cst_14 = arith.constant dense<0.000000e+00> : vector<4x64xf32>
    %17 = tpu.matmul %14, %16, %cst_14 {dimension_numbers = #tpu.dot_dimension_numbers<[1], [0], [0], [1], [0, 0, 1, 1], [], []>} : vector<4x256xf32>, vector<256x64xf32>, vector<4x64xf32> -> vector<4x64xf32>
    %c1 = arith.constant 1 : index
    %c0_15 = arith.constant 0 : index
    %c0_16 = arith.constant 0 : index
    %18 = vector.load %arg6[%c1, %c0_15, %c0_16] : memref<4x256x64xf32, #tpu.memory_space<vmem>>, vector<1x256x64xf32>
    %19 = vector.shape_cast %18 : vector<1x256x64xf32> to vector<256x64xf32>
    %cst_17 = arith.constant dense<0.000000e+00> : vector<4x64xf32>
    %20 = tpu.matmul %14, %19, %cst_17 {dimension_numbers = #tpu.dot_dimension_numbers<[1], [0], [0], [1], [0, 0, 1, 1], [], []>} : vector<4x256xf32>, vector<256x64xf32>, vector<4x64xf32> -> vector<4x64xf32>
    %c2 = arith.constant 2 : index
    %c0_18 = arith.constant 0 : index
    %c0_19 = arith.constant 0 : index
    %21 = vector.load %arg6[%c2, %c0_18, %c0_19] : memref<4x256x64xf32, #tpu.memory_space<vmem>>, vector<1x256x64xf32>
    %22 = vector.shape_cast %21 : vector<1x256x64xf32> to vector<256x64xf32>
    %cst_20 = arith.constant dense<0.000000e+00> : vector<4x64xf32>
    %23 = tpu.matmul %14, %22, %cst_20 {dimension_numbers = #tpu.dot_dimension_numbers<[1], [0], [0], [1], [0, 0, 1, 1], [], []>} : vector<4x256xf32>, vector<256x64xf32>, vector<4x64xf32> -> vector<4x64xf32>
    %c3 = arith.constant 3 : index
    %c0_21 = arith.constant 0 : index
    %c0_22 = arith.constant 0 : index
    %24 = vector.load %arg6[%c3, %c0_21, %c0_22] : memref<4x256x64xf32, #tpu.memory_space<vmem>>, vector<1x256x64xf32>
    %25 = vector.shape_cast %24 : vector<1x256x64xf32> to vector<256x64xf32>
    %cst_23 = arith.constant dense<0.000000e+00> : vector<4x64xf32>
    %26 = tpu.matmul %14, %25, %cst_23 {dimension_numbers = #tpu.dot_dimension_numbers<[1], [0], [0], [1], [0, 0, 1, 1], [], []>} : vector<4x256xf32>, vector<256x64xf32>, vector<4x64xf32> -> vector<4x64xf32>
    %27 = arith.maximumf %17, %20 : vector<4x64xf32>
    %28 = arith.maximumf %23, %26 : vector<4x64xf32>
    %29 = arith.maximumf %27, %28 : vector<4x64xf32>
    %c0_24 = arith.constant 0 : index
    %c0_25 = arith.constant 0 : index
    %c0_26 = arith.constant 0 : index
    %30 = vector.load %arg7[%c0_24, %c0_25, %c0_26] : memref<1x4x64xf32, #tpu.memory_space<vmem>>, vector<1x4x64xf32>
    %31 = vector.shape_cast %30 : vector<1x4x64xf32> to vector<4x64xf32>
    %32 = vector.shape_cast %29 : vector<4x64xf32> to vector<1x4x64xf32>
    tpu.vector_store %arg7[%c0_24, %c0_25, %c0_26], %32 {strides = array<i32>} : memref<1x4x64xf32, #tpu.memory_space<vmem>>, vector<1x4x64xf32>,
    return
  }
  func.func @transform_0(%arg0: i32) -> (i32, i32, i32) {
    %c0_i32 = arith.constant 0 : i32
    %c0_i32_0 = arith.constant 0 : i32
    %c0_i32_1 = arith.constant 0 : i32
    return %arg0, %c0_i32, %c0_i32_0 : i32, i32, i32
  }
  func.func @transform_1(%arg0: i32) -> (i32, i32) {
    %c0_i32 = arith.constant 0 : i32
    %c0_i32_0 = arith.constant 0 : i32
    %c0_i32_1 = arith.constant 0 : i32
    return %c0_i32, %c0_i32_0 : i32, i32
  }
  func.func @transform_2(%arg0: i32) -> (i32, i32) {
    %c0_i32 = arith.constant 0 : i32
    %c0_i32_0 = arith.constant 0 : i32
    %c0_i32_1 = arith.constant 0 : i32
    return %c0_i32, %c0_i32_0 : i32, i32
  }
  func.func @transform_3(%arg0: i32) -> (i32, i32) {
    %c0_i32 = arith.constant 0 : i32
    %c0_i32_0 = arith.constant 0 : i32
    %c0_i32_1 = arith.constant 0 : i32
    return %c0_i32, %c0_i32_0 : i32, i32
  }
  func.func @transform_4(%arg0: i32) -> (i32, i32) {
    %c0_i32 = arith.constant 0 : i32
    %c0_i32_0 = arith.constant 0 : i32
    %c0_i32_1 = arith.constant 0 : i32
    return %c0_i32, %c0_i32_0 : i32, i32
  }
  func.func @transform_5(%arg0: i32) -> (i32, i32, i32) {
    %c0_i32 = arith.constant 0 : i32
    %c0_i32_0 = arith.constant 0 : i32
    %c0_i32_1 = arith.constant 0 : i32
    %c0_i32_2 = arith.constant 0 : i32
    return %c0_i32, %c0_i32_0, %c0_i32_1 : i32, i32, i32
  }
  func.func @transform_6(%arg0: i32) -> (i32, i32, i32) {
    %c0_i32 = arith.constant 0 : i32
    %c0_i32_0 = arith.constant 0 : i32
    %c0_i32_1 = arith.constant 0 : i32
    return %arg0, %c0_i32, %c0_i32_0 : i32, i32, i32
  }
}

</mosaic_0001>

<bundles_post_ra>
// kernel: tpu_custom_call.1
= control target key start
LH: loop header
LB: loop body
LE: loop exit
PB: predicated region body
PF: predicated region fallthrough
CT: control target
= control target key end

     0   :  { %11 = vsyncpa [#allocation3], 0  ;;  %s1743_s0 = inlined_call_operand.vmem [shape: f32[2,4,256], index: 0, kind: input, shape index: {}]   ;;  %s1744_s1 = inlined_call_operand.vmem [shape: f32[4,1], index: 1, kind: input, shape index: {}]   ;;  %s1745_s2 = inlined_call_operand.vmem [shape: f32[4,1], index: 2, kind: input, shape index: {}]   ;;  %s1746_s3 = inlined_call_operand.vmem [shape: f32[4,4], index: 3, kind: input, shape index: {}]   ;;  %s1747_s4 = inlined_call_operand.vmem [shape: f32[4,1], index: 4, kind: input, shape index: {}]   ;;  %s1748_s5 = inlined_call_operand.vmem [shape: f32[4,256,64], index: 5, kind: input, shape index: {}]   ;;  %s1749_s6 = inlined_call_operand.hbm [shape: f32[2,4,64], index: 6, kind: output, shape index: {}]  }
   0x1   :  { %13 = vsyncpa [#allocation3 + $0x1], 0  ;;  %s1254_s21 = smov 0   ;;  %s1256_s22 = smov 0  }
   0x2   :  { %s1258_s23 = smov 0   ;;  %s1260_s24 = smov 0  }
   0x3 LB: > { %s1275_s25 = sadd.s32 4294967295, %s1213_s24   ;;  %s858_s26 = sadd.s32 4294967294, %s1213_s24   ;;  %s1213_s24 = sphi %s1260_s24, %s1755_s24   ;;  %s1209_s23 = sphi %s1258_s23, %s1754_s23   ;;  %s1205_s22 = sphi %s1256_s22, %s1753_s22   ;;  %s1201_s21 = sphi %s1254_s21, %s1752_s21  }
   0x4   : > { %s1279_s27 = sadd.s32 1, %s1213_s24   ;;  %s157_s28 = sadd.s32 1, %s1209_s23 }
   0x5   : > { %s154_s29 = ssub.s32 %s1213_s24, %s1279_s27  ;;  %p167_p0 = scmp.ne.s32.totalorder %s1209_s23, %s1205_s22 }
   0x6   : > { %p155_p1 = scmp.eq.s32.totalorder %s154_s29, 0  ;;  %p168_p2 = scmp.eq.s32.totalorder %s1275_s25, 1 }
   0x7   : > { %p173_p3 = scmp.ne.s32.totalorder %s1205_s22, %s1201_s21  ;;  %p174_p4 = scmp.eq.s32.totalorder %s858_s26, 1 }
   0x8   : > { %s1290_s30 = scalar_select %p155_p1, %s1209_s23, %s157_s28  }
   0x9   : > { %p1292_p5 = por %p168_p2, %p167_p0  ;;  %p1296_p6 = por %p174_p4, %p173_p3 }
   0xa   : > { %p861_p7 = scmp.ge.s32.totalorder %s1213_s24, 1  ;;  %p215_p8 = scmp.lt.s32.totalorder %s1213_s24, 3 }
   0xc   : > { %p216_p9 = pnand %p861_p7, %p215_p8 }
   0xd   : > { %p245_p10 = scmp.lt.s32.totalorder (!%p216_p9), %s1275_s25, 1  ;;  %s242_s29 = sand.u32 (!%p216_p9), 1, %s1205_s22  }
   0xe   : > { %219 = sbr.rel (%p216_p9) target bundleno = 604 (0x25c), region = 44  ;;  %s862_s9 = sshll.u32 (!%p216_p9), %s242_s29, 2 }
   0xf   : > { %s965_s10 = sshll.u32 (!%p216_p9), %s1275_s25, 6  ;;  %s786_s16 = scalar_lea.sflag (!%p216_p9), [#allocation3], %s242_s29 }
  0x10   : > { %s1218_s18 = smov (!%p216_p9), [#allocation2]  }
  0x13   : > { %v251_v0 = vld [vmem:[%s1744_s1] sm:$0xf]  ;;  %v1215_v1 = vmov 0   ;;  %v1216_v3 = vmov 0.0   ;;  %v400_v5 = vld [vmem:[%s1748_s5 + $0xf8] sm:$0xff]  ;;  %v399_v7 = vld [vmem:[%s1748_s5 + $0xf0] sm:$0xff]  ;;  %v259_v35 = vlaneseq }
  0x14   : > { %1151 = vset.pattern.permute.xlu0 %v1215_v1  ;;  %1152 = vset.pattern.permute.xlu1 %v1215_v1  ;;  %v265_v2 = vld [vmem:[%s1745_s2] sm:$0xf]  ;;  %v384_v6 = vld [vmem:[%s1748_s5 + $0x78] sm:$0xff]  ;;  %v383_v8 = vld [vmem:[%s1748_s5 + $0x70] sm:$0xff]  ;;  %v1217_v33 = vmov 839922192  }
  0x15   : > { %254 = vperm.xlu0 %1151, %v251_v0   ;;  %362 = vmatprep.mubr.f32.mxu0 %v1216_v3  ;;  %v281_v4 = vld [vmem:[%s1747_s4] sm:$0xf]  ;;  %v398_v9 = vld [vmem:[%s1748_s5 + $0xe8] sm:$0xff]  ;;  %v396_v13 = vld [vmem:[%s1748_s5 + $0xd8] sm:$0xff]  ;;  %v257_v34 = vunpack.c.l.s4 %v1217_v33  ;;  %s246_s11 = scalar_select %p245_p10, %s1275_s25, 1  ;;  %v260_v37 = vshrl.u32 %v259_v35, 7 }
  0x16   : > { %284 = vperm.xlu1 %1152, %v281_v4   ;;  %969 = vmatprep.subr.mxu1 %v400_v5  ;;  %v382_v10 = vld [vmem:[%s1748_s5 + $0x68] sm:$0xff]  ;;  %v397_v11 = vld [vmem:[%s1748_s5 + $0xe0] sm:$0xff]  ;;  %v380_v14 = vld [vmem:[%s1748_s5 + $0x58] sm:$0xff]  ;;  %vm293_vm0 = vcmask 1043456   ;;  %vm289_vm1 = vcmask 31744   ;;  %vm783_vm2 = vcmask 519168  }
  0x17   : > { %970 = vmatpush3.msra.mxu1 %v384_v6  ;;  %v381_v12 = vld [vmem:[%s1748_s5 + $0x60] sm:$0xff]  ;;  %v395_v15 = vld [vmem:[%s1748_s5 + $0xd0] sm:$0xff]  ;;  %v394_v17 = vld [vmem:[%s1748_s5 + $0xc8] sm:$0xff]  ;;  %v258_v36 = vunpack.c.0.s8 %v257_v34  ;;  %s968_s12 = sshll.u32 %s246_s11, 3  ;;  %s244_s11 = scalar_lea.vmem [#allocation2], %s862_s9 }
  0x18   : > { %971 = vmatprep.subr.mxu1 %v399_v7  ;;  %v379_v16 = vld [vmem:[%s1748_s5 + $0x50] sm:$0xff]  ;;  %v378_v18 = vld [vmem:[%s1748_s5 + $0x48] sm:$0xff]  ;;  %v393_v19 = vld [vmem:[%s1748_s5 + $0xc0] sm:$0xff]  ;;  %s249_s15 = scalar_lea.vmem %s1743_s0, %s968_s12  ;;  %s799_s12 = sshll.u32 %s244_s11, 4  ;;  %s800_s12 = int_to_ptr.vmem [resolvable:$true] %s799_s12 }
  0x19   : > { %268 = vperm.xlu0 %1151, %v265_v2   ;;  %972 = vmatpush3.msra.mxu1 %v383_v8  ;;  %v377_v20 = vld [vmem:[%s1748_s5 + $0x40] sm:$0xff]  ;;  %v392_v21 = vld [vmem:[%s1748_s5 + $0xb8] sm:$0xff]  ;;  %v391_v23 = vld [vmem:[%s1748_s5 + $0xb0] sm:$0xff]  ;;  %v261_v38 = vsub.s32 %v258_v36, %v260_v37  ;;  %s1153_s17 = scalar_lea.vmem %s800_s12, 64  ;;  %s1157_s25 = sshll.u32 %s1218_s18, 4  ;;  %s1158_s25 = int_to_ptr.vmem [resolvable:$false] %s1157_s25 }
  0x1a   : > { %973 = vmatprep.subr.mxu1 %v398_v9  ;;  %v376_v22 = vld [vmem:[%s1748_s5 + $0x38] sm:$0xff]  ;;  %v375_v24 = vld [vmem:[%s1748_s5 + $0x30] sm:$0xff]  ;;  %v390_v25 = vld [vmem:[%s1748_s5 + $0xa8] sm:$0xff]  ;;  %p1154_p11 = scmp.ne.s32.totalorder %s800_s12, %s1153_s17  ;;  %s1159_s19 = scalar_lea.vmem %s1158_s25, 128 }
  0x1b   : > { %974 = vmatpush3.msra.mxu1 %v382_v10  ;;  %v374_v26 = vld [vmem:[%s1748_s5 + $0x28] sm:$0xff]  ;;  %v389_v27 = vld [vmem:[%s1748_s5 + $0xa0] sm:$0xff]  ;;  %v388_v29 = vld [vmem:[%s1748_s5 + $0x98] sm:$0xff]  ;;  %p1160_p0 = scmp.lt.s32.totalorder %s800_s12, %s1158_s25  ;;  %p1161_p1 = scmp.lt.s32.totalorder %s1159_s19, %s1153_s17 }
  0x1c   : > { %975 = vmatprep.subr.mxu1 %v397_v11  ;;  %v373_v28 = vld [vmem:[%s1748_s5 + $0x20] sm:$0xff]  ;;  %v372_v30 = vld [vmem:[%s1748_s5 + $0x18] sm:$0xff]  ;;  %v387_v31 = vld [vmem:[%s1748_s5 + $0x90] sm:$0xff]  ;;  %p1155_p12 = pnand %p1154_p11, %p1292_p5 }
  0x1d   : > { %976 = vmatpush3.msra.mxu1 %v381_v12  ;;  %v371_v32 = vld [vmem:[%s1748_s5 + $0x10] sm:$0xff]  ;;  %v250_v41 = vld [vmem:[%s249_s15] sm:$0xff]  ;;  %v899_v49 = vld [vmem:[%s1748_s5 + $0x1f8] sm:$0xff]  ;;  %s797_s15 = scalar_lea.hbm %s1749_s6, %s965_s10  ;;  %p1162_p2 = por %p1161_p1, %p1160_p0 }
  0x1e   : > { %977 = vmatprep.subr.mxu1 %v396_v13  ;;  %v280_v48 = vld [vmem:[%s1746_s3] sm:$0xf]  ;;  %v883_v50 = vld [vmem:[%s1748_s5 + $0x178] sm:$0xff]  ;;  %v898_v51 = vld [vmem:[%s1748_s5 + $0x1f0] sm:$0xff]  ;;  %p1156_p13 = pneg %p1155_p12 }
  0x1f   : > { %978 = vmatpush3.msra.mxu1 %v380_v14  ;;  %v882_v52 = vld [vmem:[%s1748_s5 + $0x170] sm:$0xff]  ;;  %v897_v53 = vld [vmem:[%s1748_s5 + $0x1e8] sm:$0xff]  ;;  %v896_v55 = vld [vmem:[%s1748_s5 + $0x1e0] sm:$0xff] }
  0x20   : > { %979 = vmatprep.subr.mxu1 %v395_v15  ;;  %v881_v54 = vld [vmem:[%s1748_s5 + $0x168] sm:$0xff]  ;;  %v880_v56 = vld [vmem:[%s1748_s5 + $0x160] sm:$0xff]  ;;  %v895_v57 = vld [vmem:[%s1748_s5 + $0x1d8] sm:$0xff]  ;;  %p1163_p3 = pnand %p1162_p2, %p1156_p13 }
  0x21   : > { %980 = vmatpush3.msra.mxu1 %v379_v16  ;;  %v879_v58 = vld [vmem:[%s1748_s5 + $0x158] sm:$0xff]  ;;  %v894_v59 = vld [vmem:[%s1748_s5 + $0x1d0] sm:$0xff]  ;;  %v893_v61 = vld [vmem:[%s1748_s5 + $0x1c8] sm:$0xff] }
  0x22   : > { %981 = vmatprep.subr.mxu1 %v394_v17  ;;  %v878_v60 = vld [vmem:[%s1748_s5 + $0x150] sm:$0xff]  ;;  %v877_v62 = vld [vmem:[%s1748_s5 + $0x148] sm:$0xff]  ;;  %v892_v63 = vld [vmem:[%s1748_s5 + $0x1c0] sm:$0xff] }
  0x23   : > { %982 = vmatpush3.msra.mxu1 %v378_v18  ;;  %v876_v0 = vld [vmem:[%s1748_s5 + $0x140] sm:$0xff]  ;;  %v891_v1 = vld [vmem:[%s1748_s5 + $0x1b8] sm:$0xff]  ;;  %v890_v3 = vld [vmem:[%s1748_s5 + $0x1b0] sm:$0xff] }
  0x24   : > { %983 = vmatprep.subr.mxu1 %v393_v19  ;;  %v875_v2 = vld [vmem:[%s1748_s5 + $0x138] sm:$0xff]  ;;  %v874_v4 = vld [vmem:[%s1748_s5 + $0x130] sm:$0xff]  ;;  %v889_v5 = vld [vmem:[%s1748_s5 + $0x1a8] sm:$0xff] }
  0x25   : > { %984 = vmatpush3.msra.mxu1 %v377_v20  ;;  %v873_v6 = vld [vmem:[%s1748_s5 + $0x128] sm:$0xff]  ;;  %v888_v7 = vld [vmem:[%s1748_s5 + $0x1a0] sm:$0xff]  ;;  %v887_v9 = vld [vmem:[%s1748_s5 + $0x198] sm:$0xff] }
  0x26   : > { %985 = vmatprep.subr.mxu1 %v392_v21  ;;  %v872_v8 = vld [vmem:[%s1748_s5 + $0x120] sm:$0xff]  ;;  %v871_v10 = vld [vmem:[%s1748_s5 + $0x118] sm:$0xff]  ;;  %v886_v11 = vld [vmem:[%s1748_s5 + $0x190] sm:$0xff] }
  0x27   : > { %986 = vmatpush3.msra.mxu1 %v376_v22  ;;  %v870_v12 = vld [vmem:[%s1748_s5 + $0x110] sm:$0xff]  ;;  %v386_v13 = vld [vmem:[%s1748_s5 + $0x88] sm:$0xff]  ;;  %v385_v17 = vld [vmem:[%s1748_s5 + $0x80] sm:$0xff] }
  0x28   : > { %987 = vmatprep.subr.mxu1 %v391_v23  ;;  %v885_v14 = vld [vmem:[%s1748_s5 + $0x188] sm:$0xff]  ;;  %v884_v18 = vld [vmem:[%s1748_s5 + $0x180] sm:$0xff]  ;;  %v931_v21 = vld [vmem:[%s1748_s5 + $0x2f8] sm:$0xff] }
  0x29   : > { %988 = vmatpush3.msra.mxu1 %v375_v24  ;;  %v370_v15 = vld [vmem:[%s1748_s5 + $0x8] sm:$0xff]  ;;  %v369_v19 = vld [vmem:[%s1748_s5] sm:$0xff]  ;;  %v963_v22 = vld [vmem:[%s1748_s5 + $0x3f8] sm:$0xff] }
  0x2a   : > { %989 = vmatprep.subr.mxu1 %v390_v25  ;;  %v869_v16 = vld [vmem:[%s1748_s5 + $0x108] sm:$0xff]  ;;  %v868_v20 = vld [vmem:[%s1748_s5 + $0x100] sm:$0xff]  ;;  %v946_v33 = vld [vmem:[%s1748_s5 + $0x370] sm:$0xff] }
  0x2b   : > { %990 = vmatpush3.msra.mxu1 %v374_v26  ;;  %v929_v34 = vld [vmem:[%s1748_s5 + $0x2e8] sm:$0xff] }
  0x2c   : > { %991 = vmatprep.subr.mxu1 %v389_v27  ;;  %v961_v35 = vld [vmem:[%s1748_s5 + $0x3e8] sm:$0xff] }
  0x2d   : > { %992 = vmatpush3.msra.mxu1 %v373_v28  ;;  %v915_v28 = vld [vmem:[%s1748_s5 + $0x278] sm:$0xff]  ;;  %v913_v36 = vld [vmem:[%s1748_s5 + $0x268] sm:$0xff] }
  0x2e   : > { %993 = vmatprep.subr.mxu1 %v388_v29  ;;  %v947_v29 = vld [vmem:[%s1748_s5 + $0x378] sm:$0xff]  ;;  %v945_v37 = vld [vmem:[%s1748_s5 + $0x368] sm:$0xff] }
  0x2f   : > { %994 = vmatpush3.msra.mxu1 %v372_v30  ;;  %v930_v30 = vld [vmem:[%s1748_s5 + $0x2f0] sm:$0xff] }
  0x30   : > { %995 = vmatprep.subr.mxu1 %v387_v31  ;;  %v962_v31 = vld [vmem:[%s1748_s5 + $0x3f0] sm:$0xff] }
  0x31   : > { %996 = vmatpush3.msra.mxu1 %v371_v32  ;;  %v914_v32 = vld [vmem:[%s1748_s5 + $0x270] sm:$0xff] }
  0x32   : > { %997 = vmatprep.subr.mxu1 %v386_v13  ;;  %v935_v13 = vld [vmem:[%s1748_s5 + $0x318] sm:$0xff] }
  0x33   : > { %998 = vmatpush3.msra.mxu1 %v370_v15  ;;  %v950_v15 = vld [vmem:[%s1748_s5 + $0x390] sm:$0xff] }
  0x34   : > { %999 = vmatprep.subr.mxu1 %v385_v17  ;;  %v934_v17 = vld [vmem:[%s1748_s5 + $0x310] sm:$0xff] }
  0x35   : > { %1000 = vmatpush3.msra.mxu1 %v369_v19  ;;  %v949_v19 = vld [vmem:[%s1748_s5 + $0x388] sm:$0xff] }
  0x36   : > { %1039 = vmatprep.subr.mxu1 %v931_v21  ;;  %v933_v21 = vld [vmem:[%s1748_s5 + $0x308] sm:$0xff] }
  0x90   : > { %v255_v39 = vpop.permute.xlu0 %254 }
  0x91   : > { %v262_v40 = vrot.slane %v255_v39, %v261_v38  ;;  %v285_v24 = vpop.permute.xlu1 %284  ;;  %v960_v39 = vld [vmem:[%s1748_s5 + $0x3e0] sm:$0xff] }
  0x93   : > { %v264_v43 = vmul.f32 %v262_v40, %v250_v41  ;;  %v912_v40 = vld [vmem:[%s1748_s5 + $0x260] sm:$0xff] }
  0x94   : > { %v269_v42 = vpop.permute.xlu0 %268  ;;  %v944_v41 = vld [vmem:[%s1748_s5 + $0x360] sm:$0xff] }
  0x95   : > { %v276_v44 = vrot.slane %v269_v42, %v261_v38  ;;  %v928_v38 = vld [vmem:[%s1748_s5 + $0x2e0] sm:$0xff]  ;;  %v927_v42 = vld [vmem:[%s1748_s5 + $0x2d8] sm:$0xff] }
  0x97   : > { %v278_v45 = vadd.f32 %v276_v44, %v264_v43  ;;  %v959_v43 = vld [vmem:[%s1748_s5 + $0x3d8] sm:$0xff] }
  0x98   : > { %v911_v44 = vld [vmem:[%s1748_s5 + $0x258] sm:$0xff] }
  0x99   : > { %v279_v46 = vmax.f32 %v278_v45, 0.0  ;;  %v943_v45 = vld [vmem:[%s1748_s5 + $0x358] sm:$0xff] }
  0x9b   : > { %v288_v47 = vcombine.high %v279_v46, %v279_v46 }
  0x9d   : > { %865 = vmatprep.subr.msk.mxu0 %vm293_vm0, %v288_v47  ;;  %v958_v47 = vld [vmem:[%s1748_s5 + $0x3d0] sm:$0xff] }
  0x9e   : > { %866 = vmatpush1.msk.msra.mxu0 %vm293_vm0, %v279_v46  ;;  %v926_v46 = vld [vmem:[%s1748_s5 + $0x2d0] sm:$0xff] }
  0x9f   : > { %867 = vmatmul.mubr.msk.f32.vlgmr.msra.gmra.mxu0 %vm289_vm1, %v280_v48  ;;  %1004 = vmatprep.subr.mxu0 %v899_v49  ;;  %v910_v48 = vld [vmem:[%s1748_s5 + $0x250] sm:$0xff] }
  0xa0   : > { %1005 = vmatpush3.msra.mxu0 %v883_v50  ;;  %v942_v49 = vld [vmem:[%s1748_s5 + $0x350] sm:$0xff]  ;;  %v925_v50 = vld [vmem:[%s1748_s5 + $0x2c8] sm:$0xff] }
  0xa1   : > { %1006 = vmatprep.subr.mxu0 %v898_v51  ;;  %v957_v51 = vld [vmem:[%s1748_s5 + $0x3c8] sm:$0xff] }
  0xa2   : > { %1007 = vmatpush3.msra.mxu0 %v882_v52  ;;  %v909_v52 = vld [vmem:[%s1748_s5 + $0x248] sm:$0xff] }
  0xa3   : > { %1008 = vmatprep.subr.mxu0 %v897_v53  ;;  %v941_v53 = vld [vmem:[%s1748_s5 + $0x348] sm:$0xff] }
  0xa4   : > { %1009 = vmatpush3.msra.mxu0 %v881_v54  ;;  %v924_v54 = vld [vmem:[%s1748_s5 + $0x2c0] sm:$0xff] }
  0xa5   : > { %1010 = vmatprep.subr.mxu0 %v896_v55  ;;  %v956_v55 = vld [vmem:[%s1748_s5 + $0x3c0] sm:$0xff] }
  0xa6   : > { %1011 = vmatpush3.msra.mxu0 %v880_v56  ;;  %v908_v56 = vld [vmem:[%s1748_s5 + $0x240] sm:$0xff] }
  0xa7   : > { %1012 = vmatprep.subr.mxu0 %v895_v57  ;;  %v940_v57 = vld [vmem:[%s1748_s5 + $0x340] sm:$0xff] }
  0xa8   : > { %1013 = vmatpush3.msra.mxu0 %v879_v58  ;;  %v923_v58 = vld [vmem:[%s1748_s5 + $0x2b8] sm:$0xff] }
  0xa9   : > { %1014 = vmatprep.subr.mxu0 %v894_v59  ;;  %v955_v59 = vld [vmem:[%s1748_s5 + $0x3b8] sm:$0xff] }
  0xaa   : > { %1015 = vmatpush3.msra.mxu0 %v878_v60  ;;  %v907_v60 = vld [vmem:[%s1748_s5 + $0x238] sm:$0xff] }
  0xab   : > { %1016 = vmatprep.subr.mxu0 %v893_v61  ;;  %v939_v61 = vld [vmem:[%s1748_s5 + $0x338] sm:$0xff] }
  0xac   : > { %1017 = vmatpush3.msra.mxu0 %v877_v62  ;;  %v922_v62 = vld [vmem:[%s1748_s5 + $0x2b0] sm:$0xff] }
  0xad   : > { %1018 = vmatprep.subr.mxu0 %v892_v63  ;;  %v954_v63 = vld [vmem:[%s1748_s5 + $0x3b0] sm:$0xff] }
  0xae   : > { %1019 = vmatpush3.msra.mxu0 %v876_v0  ;;  %v906_v0 = vld [vmem:[%s1748_s5 + $0x230] sm:$0xff] }
  0xaf   : > { %1020 = vmatprep.subr.mxu0 %v891_v1  ;;  %v938_v1 = vld [vmem:[%s1748_s5 + $0x330] sm:$0xff] }
  0xb0   : > { %1021 = vmatpush3.msra.mxu0 %v875_v2  ;;  %v921_v2 = vld [vmem:[%s1748_s5 + $0x2a8] sm:$0xff] }
  0xb1   : > { %1022 = vmatprep.subr.mxu0 %v890_v3  ;;  %v953_v3 = vld [vmem:[%s1748_s5 + $0x3a8] sm:$0xff] }
  0xb2   : > { %1023 = vmatpush3.msra.mxu0 %v874_v4  ;;  %v905_v4 = vld [vmem:[%s1748_s5 + $0x228] sm:$0xff] }
  0xb3   : > { %1024 = vmatprep.subr.mxu0 %v889_v5  ;;  %v937_v5 = vld [vmem:[%s1748_s5 + $0x328] sm:$0xff] }
  0xb4   : > { %1025 = vmatpush3.msra.mxu0 %v873_v6  ;;  %v920_v6 = vld [vmem:[%s1748_s5 + $0x2a0] sm:$0xff] }
  0xb5   : > { %1026 = vmatprep.subr.mxu0 %v888_v7  ;;  %v952_v7 = vld [vmem:[%s1748_s5 + $0x3a0] sm:$0xff] }
  0xb6   : > { %1027 = vmatpush3.msra.mxu0 %v872_v8  ;;  %v904_v8 = vld [vmem:[%s1748_s5 + $0x220] sm:$0xff] }
  0xb7   : > { %1028 = vmatprep.subr.mxu0 %v887_v9  ;;  %v936_v9 = vld [vmem:[%s1748_s5 + $0x320] sm:$0xff] }
  0xb8   : > { %1029 = vmatpush3.msra.mxu0 %v871_v10  ;;  %v919_v10 = vld [vmem:[%s1748_s5 + $0x298] sm:$0xff] }
  0xb9   : > { %1030 = vmatprep.subr.mxu0 %v886_v11  ;;  %v951_v11 = vld [vmem:[%s1748_s5 + $0x398] sm:$0xff] }
  0xba   : > { %1031 = vmatpush3.msra.mxu0 %v870_v12  ;;  %v903_v12 = vld [vmem:[%s1748_s5 + $0x218] sm:$0xff] }
  0xbb   : > { %1032 = vmatprep.subr.mxu0 %v885_v14  ;;  %v918_v14 = vld [vmem:[%s1748_s5 + $0x290] sm:$0xff] }
  0xbc   : > { %1033 = vmatpush3.msra.mxu0 %v869_v16  ;;  %v902_v16 = vld [vmem:[%s1748_s5 + $0x210] sm:$0xff] }
  0xbd   : > { %1034 = vmatprep.subr.mxu0 %v884_v18  ;;  %v917_v18 = vld [vmem:[%s1748_s5 + $0x288] sm:$0xff] }
  0xbe   : > { %1035 = vmatpush3.msra.mxu0 %v868_v20  ;;  %v901_v20 = vld [vmem:[%s1748_s5 + $0x208] sm:$0xff] }
  0xbf   : > { %1074 = vmatprep.subr.mxu0 %v963_v22  ;;  %v916_v22 = vld [vmem:[%s1748_s5 + $0x280] sm:$0xff] }
 0x15f   : > { %v364_v23 = vpop.f32.mrf.mxu0 }
 0x160   : > { %v1517_v27 = vadd.f32 %v364_v23, %v285_v24  ;;  %v948_v23 = vld [vmem:[%s1748_s5 + $0x380] sm:$0xff] }
 0x161   : > { %v366_v25 = vpop.f32.mrf.mxu0 }
 0x162   : > { %v367_v26 = vadd.f32 %v366_v25, %v285_v24  ;;  %v900_v24 = vld [vmem:[%s1748_s5 + $0x200] sm:$0xff] }
 0x163   : > { %v932_v25 = vld [vmem:[%s1748_s5 + $0x300] sm:$0xff] }
 0x164   : > { %465 = vmatprep.mubr.f32.mxu1 %v367_v26  ;;  %568 = vmatprep.mubr.f32.mxu0 %v367_v26 }
 0x165   : > { %466 = vmatmul.mubr.f32.vlgmr.msra.gmra.mxu1 %v1517_v27  ;;  %569 = vmatmul.mubr.f32.vlgmr.msra.gmra.mxu0 %v1517_v27 }
 0x166   : > { %1040 = vmatpush3.msra.mxu1 %v915_v28  ;;  %1075 = vmatpush3.msra.mxu0 %v947_v29 }
 0x167   : > { %1041 = vmatprep.subr.mxu1 %v930_v30  ;;  %671 = vmatprep.mubr.f32.mxu1 %v367_v26 }
 0x168   : > { %1076 = vmatprep.subr.mxu0 %v962_v31  ;;  %774 = vmatprep.mubr.f32.mxu0 %v367_v26 }
 0x169   : > { %1042 = vmatpush3.msra.mxu1 %v914_v32  ;;  %1077 = vmatpush3.msra.mxu0 %v946_v33 }
 0x16a   : > { %1043 = vmatprep.subr.mxu1 %v929_v34  ;;  %1078 = vmatprep.subr.mxu0 %v961_v35 }
 0x16b   : > { %1044 = vmatpush3.msra.mxu1 %v913_v36  ;;  %1079 = vmatpush3.msra.mxu0 %v945_v37 }
 0x16c   : > { %1045 = vmatprep.subr.mxu1 %v928_v38  ;;  %1080 = vmatprep.subr.mxu0 %v960_v39 }
 0x16d   : > { %1046 = vmatpush3.msra.mxu1 %v912_v40  ;;  %1081 = vmatpush3.msra.mxu0 %v944_v41 }
 0x16e   : > { %1047 = vmatprep.subr.mxu1 %v927_v42  ;;  %1082 = vmatprep.subr.mxu0 %v959_v43 }
 0x16f   : > { %1048 = vmatpush3.msra.mxu1 %v911_v44  ;;  %1083 = vmatpush3.msra.mxu0 %v943_v45 }
 0x170   : > { %1049 = vmatprep.subr.mxu1 %v926_v46  ;;  %1084 = vmatprep.subr.mxu0 %v958_v47 }
 0x171   : > { %1050 = vmatpush3.msra.mxu1 %v910_v48  ;;  %1085 = vmatpush3.msra.mxu0 %v942_v49 }
 0x172   : > { %1051 = vmatprep.subr.mxu1 %v925_v50  ;;  %1086 = vmatprep.subr.mxu0 %v957_v51 }
 0x173   : > { %1052 = vmatpush3.msra.mxu1 %v909_v52  ;;  %1087 = vmatpush3.msra.mxu0 %v941_v53 }
 0x174   : > { %1053 = vmatprep.subr.mxu1 %v924_v54  ;;  %1088 = vmatprep.subr.mxu0 %v956_v55 }
 0x175   : > { %1054 = vmatpush3.msra.mxu1 %v908_v56  ;;  %1089 = vmatpush3.msra.mxu0 %v940_v57 }
 0x176   : > { %1055 = vmatprep.subr.mxu1 %v923_v58  ;;  %1090 = vmatprep.subr.mxu0 %v955_v59 }
 0x177   : > { %1056 = vmatpush3.msra.mxu1 %v907_v60  ;;  %1091 = vmatpush3.msra.mxu0 %v939_v61 }
 0x178   : > { %1057 = vmatprep.subr.mxu1 %v922_v62  ;;  %1092 = vmatprep.subr.mxu0 %v954_v63 }
 0x179   : > { %1058 = vmatpush3.msra.mxu1 %v906_v0  ;;  %1093 = vmatpush3.msra.mxu0 %v938_v1 }
 0x17a   : > { %1059 = vmatprep.subr.mxu1 %v921_v2  ;;  %1094 = vmatprep.subr.mxu0 %v953_v3 }
 0x17b   : > { %1060 = vmatpush3.msra.mxu1 %v905_v4  ;;  %1095 = vmatpush3.msra.mxu0 %v937_v5 }
 0x17c   : > { %1061 = vmatprep.subr.mxu1 %v920_v6  ;;  %1096 = vmatprep.subr.mxu0 %v952_v7 }
 0x17d   : > { %1062 = vmatpush3.msra.mxu1 %v904_v8  ;;  %1097 = vmatpush3.msra.mxu0 %v936_v9 }
 0x17e   : > { %1063 = vmatprep.subr.mxu1 %v919_v10  ;;  %1098 = vmatprep.subr.mxu0 %v951_v11 }
 0x17f   : > { %1064 = vmatpush3.msra.mxu1 %v903_v12  ;;  %1099 = vmatpush3.msra.mxu0 %v935_v13 }
 0x180   : > { %1065 = vmatprep.subr.mxu1 %v918_v14  ;;  %1100 = vmatprep.subr.mxu0 %v950_v15 }
 0x181   : > { %1066 = vmatpush3.msra.mxu1 %v902_v16  ;;  %1101 = vmatpush3.msra.mxu0 %v934_v17 }
 0x182   : > { %1067 = vmatprep.subr.mxu1 %v917_v18  ;;  %1102 = vmatprep.subr.mxu0 %v949_v19 }
 0x183   : > { %1068 = vmatpush3.msra.mxu1 %v901_v20  ;;  %1103 = vmatpush3.msra.mxu0 %v933_v21 }
 0x184   : > { %1069 = vmatprep.subr.mxu1 %v916_v22  ;;  %1104 = vmatprep.subr.mxu0 %v948_v23 }
 0x185   : > { %1070 = vmatpush3.msra.mxu1 %v900_v24  ;;  %1105 = vmatpush3.msra.mxu0 %v932_v25 }
 0x186   : > { %672 = vmatmul.mubr.f32.vlgmr.msra.gmra.mxu1 %v1517_v27  ;;  %775 = vmatmul.mubr.f32.vlgmr.msra.gmra.mxu0 %v1517_v27 }
 0x225   : > { %v1001_v26 = vpop.f32.mrf.mxu1  ;;  %v1036_v28 = vpop.f32.mrf.mxu0 }
 0x227   : > { %v1002_v29 = vpop.f32.mrf.mxu1  ;;  %v1037_v30 = vpop.f32.mrf.mxu0 }
 0x228   : > { %v1003_v33 = vadd.f32 %v1002_v29, %v1001_v26  ;;  %v1038_v34 = vadd.f32 %v1037_v30, %v1036_v28 }
 0x22a   : > { %v780_v39 = vmax.f32 %v1003_v33, %v1038_v34 }
 0x246   : > { %v1071_v31 = vpop.f32.mrf.mxu1  ;;  %v1106_v32 = vpop.f32.mrf.mxu0 }
 0x248   : > { %v1072_v35 = vpop.f32.mrf.mxu1  ;;  %v1107_v36 = vpop.f32.mrf.mxu0 }
 0x249   : > { %v1073_v37 = vadd.f32 %v1072_v35, %v1071_v31  ;;  %v1108_v38 = vadd.f32 %v1107_v36, %v1106_v32 }
 0x24b   : > { %v781_v27 = vmax.f32 %v1073_v37, %v1108_v38 }
 0x24d   : > { %v782_v40 = vmax.f32 %v780_v39, %v781_v27 }
 0x24f   : > { %784 = vst.msk [vmem:[%s244_s11] sm:$0xf] %vm783_vm2, %v782_v40 }
 0x250   : > { %1166 = shalt.err (!%p1163_p3)
}
 0x251   : > { %s1167_s20 = scalar_lea.hbm %s797_s15, 64  ;;  %s1171_s29 = scalar_lea.hbm %s1749_s6, 128 }
 0x252   : > { %p1168_p4 = scmp.ne.s32.totalorder %s797_s15, %s1167_s20  ;;  %p1172_p9 = scmp.lt.s32.totalorder %s797_s15, %s1749_s6 }
 0x253   : > { %p1173_p10 = scmp.lt.s32.totalorder %s1171_s29, %s1167_s20 }
 0x254   : > { %p1169_p7 = pnand %p1168_p4, %p1292_p5 }
 0x255   : > { %p1174_p11 = por %p1173_p10, %p1172_p9 }
 0x256   : > { %p1170_p8 = pneg %p1169_p7 }
 0x258   : > { %p1175_p12 = pnand %p1174_p11, %p1170_p8 }
 0x25a   : > { %1178 = shalt.err (!%p1175_p12)
}
 0x25b   : > { %1109 = dma.vmem_to_hbm [thread:$0]  (%p1292_p5), %s800_s12, 64, %s797_s15, %s786_s16  }
 0x25c PF: > { %p1115_p13 = scmp.ge.s32.totalorder %s1213_s24, 2  ;;  %s811_s11 = sand.u32 1, %s1201_s21  }
 0x25d   : > { %s812_s13 = scalar_lea.sflag [#allocation3], %s811_s11 }
 0x25e   : > { %p1112_p0 = pnand %p1115_p13, %p1296_p6 }
 0x260   : > { %p1113_p1 = pneg %p1112_p0 }
 0x262   : > { %1196 = dma.done.wait (%p1113_p1), %s812_s13, 64  }
 0x263   : > { %1198 = vsyncadd (%p1113_p1), %s812_s13, 4294967232  ;;  %p16_p2 = scmp.ge.s32.totalorder %s1279_s27, 4   ;;  %s1752_s21 = smov %s1205_s22 }
 0x264   : > { %s1753_s22 = smov %s1209_s23  ;;  %s1754_s23 = smov %s1290_s30 }
 0x265   : > { %s1755_s24 = smov %s1279_s27  ;;  %18 = sbr.rel (!%p16_p2) target bundleno = 3 (0x3), region = 82 }
 0x26a   :  { %817 = vsyncpa [#allocation3], 1 }
 0x26b   :  { %819 = vsyncpa [#allocation3 + $0x1], 1 }

</bundles_post_ra>
